<compile_context>
chip_gen: v6e
topology: v6e:2x2x1
jax: 0.10.0
libtpu: 0.0.40
codegen_flags: <defaults>
</compile_context>

<pallas_src>
import functools
import math

import jax
import jax.numpy as jnp
from jax.experimental import pallas as pl
from jax.experimental.pallas import tpu as pltpu


# ---------------------------------------------------------------------------
# helpers / generation-aware VMEM budgeting
# ---------------------------------------------------------------------------

def _round_up(x, m):
    return ((x + m - 1) // m) * m


def _sublane(dtype):
    # Minimum sublane multiple for dense packing: 8 (f32), 16 (bf16), 32 (i8).
    return max(8, 32 // jnp.dtype(dtype).itemsize)


@functools.lru_cache(maxsize=None)
def _vmem_limit_bytes():
    cap = 128 * 1024 * 1024
    try:
        info = pltpu.get_tpu_info()
        c = getattr(info, "vmem_capacity_bytes", None)
        if c:
            cap = int(c)
    except Exception:
        pass
    # v7x has 64 MiB/TC -> leave headroom for compiler-internal scratch;
    # 128 MiB parts (v5e/v6e) can take a much larger scoped limit.
    frac = 0.55 if cap <= 80 * 1024 * 1024 else 0.75
    return int(cap * frac)


# ---------------------------------------------------------------------------
# RMSNorm kernel (Qwen3-compatible: compute in f32, cast back to input dtype)
# ---------------------------------------------------------------------------

def _rmsnorm_kernel(x_ref, scale_ref, o_ref, *, eps):
    x = x_ref[...].astype(jnp.float32)                       # (tile_rows, D)
    var = jnp.mean(x * x, axis=-1, keepdims=True)
    y = x * jax.lax.rsqrt(var + eps)
    y = y * scale_ref[...].astype(jnp.float32)               # (1, D) broadcast
    o_ref[...] = y.astype(o_ref.dtype)
    # TODO(synk): bias=True (shift) path not implemented; Qwen3 uses bias=False.


def _choose_rmsnorm_tile_rows(R, D, dtype, max_rows=2048):
    itemsize = jnp.dtype(dtype).itemsize
    budget = _vmem_limit_bytes() // 2
    bytes_per_row = D * (2 * itemsize + 2 * itemsize + 2 * 4)
    rows = max(budget // max(bytes_per_row, 1), 16)
    rows = min(int(rows), max_rows)
    rows = max((rows // 16) * 16, 16)
    rows = min(rows, max(_round_up(R, 16), 16))
    # v7x has 2 TensorCores: expose >= 2 grid blocks when the row count allows.
    if rows >= _round_up(R, 16) and R >= 32:
        rows = max(16, (_round_up(R, 16) // 2) // 16 * 16)
    return int(rows)


def rmsnorm(x, scale, *, eps=1e-6, tile_rows=None):
    """RMSNorm over the last axis of x.  scale is a (D,) f32 parameter."""
    orig_shape = x.shape
    D = orig_shape[-1]
    x2d = x.reshape(-1, D)
    R = x2d.shape[0]

    if tile_rows is None:
        tile_rows = _choose_rmsnorm_tile_rows(R, D, x.dtype)

    R_pad = _round_up(R, tile_rows)
    if R_pad != R:
        x2d = jnp.pad(x2d, ((0, R_pad - R), (0, 0)))

    scale2d = scale.reshape(1, D)
    out = pl.pallas_call(
        functools.partial(_rmsnorm_kernel, eps=eps),
        out_shape=jax.ShapeDtypeStruct((R_pad, D), x.dtype),
        grid=(R_pad // tile_rows,),
        in_specs=[
            pl.BlockSpec((tile_rows, D), lambda i: (i, 0)),
            pl.BlockSpec((1, D), lambda i: (0, 0)),   # resident scale row
        ],
        out_specs=pl.BlockSpec((tile_rows, D), lambda i: (i, 0)),
        compiler_params=pltpu.CompilerParams(
            dimension_semantics=("parallel",),
            vmem_limit_bytes=_vmem_limit_bytes(),
        ),
    )(x2d, scale2d)

    if R_pad != R:
        out = out[:R]
    return out.reshape(orig_shape)


def rmsnorm_ref(x, scale, *, eps=1e-6):
    input_dtype = x.dtype
    xf = x.astype(jnp.float32)
    variance = jnp.mean(xf * xf, axis=-1, keepdims=True)
    norm_x = xf * jax.lax.rsqrt(variance + eps)
    norm_x = norm_x * scale
    return norm_x.astype(input_dtype)


# ---------------------------------------------------------------------------
# Tiled matmul kernels (plain, fused-residual, fused-SiLU-gate FFN up)
# ---------------------------------------------------------------------------

def _matmul_kernel(a_ref, b_ref, o_ref, acc_ref):
    @pl.when(pl.program_id(2) == 0)
    def _():
        acc_ref[...] = jnp.zeros_like(acc_ref)

    acc_ref[...] += jnp.dot(a_ref[...], b_ref[...],
                            preferred_element_type=jnp.float32)

    @pl.when(pl.program_id(2) == pl.num_programs(2) - 1)
    def _():
        o_ref[...] = acc_ref[...].astype(o_ref.dtype)


def _matmul_residual_kernel(a_ref, b_ref, r_ref, o_ref, acc_ref):
    @pl.when(pl.program_id(2) == 0)
    def _():
        acc_ref[...] = jnp.zeros_like(acc_ref)

    acc_ref[...] += jnp.dot(a_ref[...], b_ref[...],
                            preferred_element_type=jnp.float32)

    @pl.when(pl.program_id(2) == pl.num_programs(2) - 1)
    def _():
        o_ref[...] = (acc_ref[...] +
                      r_ref[...].astype(jnp.float32)).astype(o_ref.dtype)


def _ffn_up_kernel(x_ref, w1_ref, w2_ref, o_ref, acc1_ref, acc2_ref):
    @pl.when(pl.program_id(2) == 0)
    def _():
        acc1_ref[...] = jnp.zeros_like(acc1_ref)
        acc2_ref[...] = jnp.zeros_like(acc2_ref)

    x = x_ref[...]
    acc1_ref[...] += jnp.dot(x, w1_ref[...], preferred_element_type=jnp.float32)
    acc2_ref[...] += jnp.dot(x, w2_ref[...], preferred_element_type=jnp.float32)

    @pl.when(pl.program_id(2) == pl.num_programs(2) - 1)
    def _():
        o_ref[...] = (jax.nn.silu(acc1_ref[...]) *
                      acc2_ref[...]).astype(o_ref.dtype)


def _pick_mm_tiles(M, K, N, a_dtype, tm=256, tk=512, tn=512):
    sub = _sublane(a_dtype)
    tm = min(tm, _round_up(M, sub))
    tk = min(tk, _round_up(K, 128))
    tn = min(tn, _round_up(N, 128))
    Mp, Kp, Np = _round_up(M, tm), _round_up(K, tk), _round_up(N, tn)
    # v7x (2 TensorCores): try to expose >= 2 blocks on the parallel axes.
    if (Mp // tm) * (Np // tn) < 2:
        if Np >= 2 * 128:
            tn = max(128, (Np // 2) // 128 * 128)
            Np = _round_up(N, tn)
        elif Mp >= 2 * sub:
            tm = max(sub, (Mp // 2) // sub * sub)
            Mp = _round_up(M, tm)
    return tm, tk, tn, Mp, Kp, Np


def _mm_specs(tm, tk, tn):
    a_spec = pl.BlockSpec((tm, tk), lambda i, j, k: (i, k))
    b_spec = pl.BlockSpec((tk, tn), lambda i, j, k: (k, j))
    o_spec = pl.BlockSpec((tm, tn), lambda i, j, k: (i, j))
    return a_spec, b_spec, o_spec


def _pad2d(x, rows, cols):
    r, c = x.shape
    if (rows, cols) == (r, c):
        return x
    return jnp.pad(x, ((0, rows - r), (0, cols - c)))


def matmul(a, b, *, out_dtype=None, residual=None, tm=256, tk=512, tn=512):
    """(M, K) @ (K, N) [+ residual] -> (M, N) with f32 MXU accumulation."""
    M, K = a.shape
    K2, N = b.shape
    assert K == K2, "inner dimensions must match"
    out_dtype = out_dtype or a.dtype

    tm, tk, tn, Mp, Kp, Np = _pick_mm_tiles(M, K, N, a.dtype, tm, tk, tn)
    a_p = _pad2d(a, Mp, Kp)
    b_p = _pad2d(b, Kp, Np)
    a_spec, b_spec, o_spec = _mm_specs(tm, tk, tn)

    params = pltpu.CompilerParams(
        dimension_semantics=("parallel", "parallel", "arbitrary"),
        vmem_limit_bytes=_vmem_limit_bytes(),
    )
    grid = (Mp // tm, Np // tn, Kp // tk)
    acc = pltpu.VMEM((tm, tn), jnp.float32)

    if residual is None:
        out = pl.pallas_call(
            _matmul_kernel,
            out_shape=jax.ShapeDtypeStruct((Mp, Np), out_dtype),
            grid=grid, in_specs=[a_spec, b_spec], out_specs=o_spec,
            scratch_shapes=[acc], compiler_params=params,
        )(a_p, b_p)
    else:
        r_p = _pad2d(residual, Mp, Np)
        r_spec = pl.BlockSpec((tm, tn), lambda i, j, k: (i, j))
        out = pl.pallas_call(
            _matmul_residual_kernel,
            out_shape=jax.ShapeDtypeStruct((Mp, Np), out_dtype),
            grid=grid, in_specs=[a_spec, b_spec, r_spec], out_specs=o_spec,
            scratch_shapes=[acc], compiler_params=params,
        )(a_p, b_p, r_p)

    return out[:M, :N] if (Mp, Np) != (M, N) else out


def ffn_up(x2d, w1, w2, *, out_dtype=None, tm=256, tk=512, tn=512):
    """Fused silu(x @ w1) * (x @ w2) in one pass over the activations."""
    M, K = x2d.shape
    _, N = w1.shape
    out_dtype = out_dtype or x2d.dtype

    tm, tk, tn, Mp, Kp, Np = _pick_mm_tiles(M, K, N, x2d.dtype, tm, tk, tn)
    x_p = _pad2d(x2d, Mp, Kp)
    w1_p = _pad2d(w1, Kp, Np)
    w2_p = _pad2d(w2, Kp, Np)
    a_spec, b_spec, o_spec = _mm_specs(tm, tk, tn)

    out = pl.pallas_call(
        _ffn_up_kernel,
        out_shape=jax.ShapeDtypeStruct((Mp, Np), out_dtype),
        grid=(Mp // tm, Np // tn, Kp // tk),
        in_specs=[a_spec, b_spec, b_spec], out_specs=o_spec,
        scratch_shapes=[pltpu.VMEM((tm, tn), jnp.float32),
                        pltpu.VMEM((tm, tn), jnp.float32)],
        compiler_params=pltpu.CompilerParams(
            dimension_semantics=("parallel", "parallel", "arbitrary"),
            vmem_limit_bytes=_vmem_limit_bytes(),
        ),
    )(x_p, w1_p, w2_p)
    return out[:M, :N] if (Mp, Np) != (M, N) else out


def linear(x, w, residual=None):
    """x @ w (w stored as (in_features, out_features)), optional fused +res."""
    lead = x.shape[:-1]
    x2d = x.reshape(-1, x.shape[-1])
    r2d = None if residual is None else residual.reshape(-1, w.shape[-1])
    y = matmul(x2d, w, out_dtype=x.dtype, residual=r2d)
    return y.reshape(*lead, w.shape[-1])


def linear_ref(x, w):
    return jnp.dot(x, w, precision=jax.lax.Precision.HIGHEST).astype(x.dtype)


# ---------------------------------------------------------------------------
# Flash attention kernel (causal GQA, online softmax)
# ---------------------------------------------------------------------------

def _flash_kernel(q_ref, k_ref, v_ref, o_ref, m_sc, l_sc, acc_sc, *,
                  scale, seq_len, tile):
    qi = pl.program_id(2)
    ki = pl.program_id(3)

    @pl.when(ki == 0)
    def _():
        m_sc[...] = jnp.full_like(m_sc, -jnp.inf)
        l_sc[...] = jnp.zeros_like(l_sc)
        acc_sc[...] = jnp.zeros_like(acc_sc)

    # Skip key blocks entirely above the causal diagonal.
    @pl.when(ki <= qi)
    def _():
        q = q_ref[0, 0].astype(jnp.float32)                   # (tile, D)
        k = k_ref[0, 0].astype(jnp.float32)                   # (tile, D)
        s = jnp.dot(q, k.T, preferred_element_type=jnp.float32) * scale

        q_idx = qi * tile + jax.lax.broadcasted_iota(jnp.int32, s.shape, 0)
        k_idx = ki * tile + jax.lax.broadcasted_iota(jnp.int32, s.shape, 1)
        s = jnp.where((k_idx > q_idx) | (k_idx >= seq_len), -1e30, s)

        m_prev = m_sc[...]
        m_new = jnp.maximum(m_prev, s.max(axis=-1, keepdims=True))
        alpha = jnp.exp(m_prev - m_new)
        p = jnp.exp(s - m_new)
        l_sc[...] = alpha * l_sc[...] + p.sum(axis=-1, keepdims=True)
        acc_sc[...] = alpha * acc_sc[...] + jnp.dot(
            p.astype(v_ref.dtype), v_ref[0, 0],
            preferred_element_type=jnp.float32)
        m_sc[...] = m_new

    @pl.when(ki == pl.num_programs(3) - 1)
    def _():
        o_ref[0, 0] = (acc_sc[...] *
                       pl.reciprocal(l_sc[...], approx=True)).astype(o_ref.dtype)


def flash_attention(q, k, v, *, group_size, max_tile=128):
    """Causal GQA attention.  q: (B,H,T,D); k, v: (B,KV,T,D), H = KV*group."""
    B, H, T, D = q.shape
    scale = 1.0 / math.sqrt(D)
    tile = min(max_tile, _round_up(T, _sublane(q.dtype)))
    Tp = _round_up(T, tile)
    if Tp != T:
        pad = ((0, 0), (0, 0), (0, Tp - T), (0, 0))
        q, k, v = jnp.pad(q, pad), jnp.pad(k, pad), jnp.pad(v, pad)

    kernel = functools.partial(_flash_kernel, scale=scale, seq_len=T, tile=tile)
    out = pl.pallas_call(
        kernel,
        out_shape=jax.ShapeDtypeStruct((B, H, Tp, D), q.dtype),
        grid=(B, H, Tp // tile, Tp // tile),
        in_specs=[
            pl.BlockSpec((1, 1, tile, D), lambda b, h, qi, ki: (b, h, qi, 0)),
            # GQA: q-head h consumes kv-head h // group_size (no jnp.repeat).
            pl.BlockSpec((1, 1, tile, D),
                         lambda b, h, qi, ki: (b, h // group_size, ki, 0)),
            pl.BlockSpec((1, 1, tile, D),
                         lambda b, h, qi, ki: (b, h // group_size, ki, 0)),
        ],
        out_specs=pl.BlockSpec((1, 1, tile, D),
                               lambda b, h, qi, ki: (b, h, qi, 0)),
        scratch_shapes=[
            pltpu.VMEM((tile, 1), jnp.float32),   # running max
            pltpu.VMEM((tile, 1), jnp.float32),   # running denom
            pltpu.VMEM((tile, D), jnp.float32),   # output accumulator
        ],
        compiler_params=pltpu.CompilerParams(
            dimension_semantics=("parallel", "parallel", "parallel",
                                 "arbitrary"),
            vmem_limit_bytes=_vmem_limit_bytes(),
        ),
    )(q, k, v)
    return out[:, :, :T, :] if Tp != T else out


def _attention_ref(q, k, v, group_size, head_dim):
    """Unfused reference: repeat_interleave K/V + full-score softmax."""
    k = jnp.repeat(k, group_size, axis=1)
    v = jnp.repeat(v, group_size, axis=1)
    T = q.shape[2]
    scores = jnp.einsum("bhqd,bhkd->bhqk", q, k,
                        preferred_element_type=jnp.float32)
    causal = jnp.triu(jnp.ones((T, T), dtype=bool), k=1)
    scores = jnp.where(causal[None, None], -jnp.inf, scores)
    weights = jax.nn.softmax(scores / (head_dim ** 0.5), axis=-1)
    ctx = jnp.einsum("bhqk,bhkd->bhqd", weights.astype(v.dtype), v)
    return ctx.astype(q.dtype)


# ---------------------------------------------------------------------------
# RoPE (matches the PyTorch helpers)
# ---------------------------------------------------------------------------

def compute_rope_params(head_dim, theta_base=10000.0, context_length=4096,
                        dtype=jnp.float32):
    assert head_dim % 2 == 0, "head_dim must be even"
    inv_freq = 1.0 / theta_base ** (
        jnp.arange(0, head_dim, 2, dtype=dtype) / head_dim)
    positions = jnp.arange(context_length, dtype=dtype)
    angles = positions[:, None] * inv_freq[None, :]
    angles = jnp.concatenate([angles, angles], axis=1)
    return jnp.cos(angles), jnp.sin(angles)


def apply_rope(x, cos, sin):
    _, _, seq_len, head_dim = x.shape
    x1 = x[..., :head_dim // 2]
    x2 = x[..., head_dim // 2:]
    cos_s = cos[:seq_len, :][None, None, :, :]
    sin_s = sin[:seq_len, :][None, None, :, :]
    rotated = jnp.concatenate([-x2, x1], axis=-1)
    return (x * cos_s + rotated * sin_s).astype(x.dtype)


# ---------------------------------------------------------------------------
# Model forward (prefill path, use_cache=False)
# ---------------------------------------------------------------------------

def _gqa_attention(h, blk, cos, sin, cfg, *, use_pallas):
    b, T, _ = h.shape
    n_heads, n_kv, hd = cfg["n_heads"], cfg["n_kv_groups"], cfg["head_dim"]
    group_size = n_heads // n_kv
    d_out, kv_dim = n_heads * hd, n_kv * hd

    lin = linear if use_pallas else linear_ref
    norm = rmsnorm if use_pallas else rmsnorm_ref

    qkv = lin(h, blk["wqkv"])                       # fused W_q / W_k / W_v
    q = qkv[..., :d_out].reshape(b, T, n_heads, hd).transpose(0, 2, 1, 3)
    k = qkv[..., d_out:d_out + kv_dim].reshape(b, T, n_kv, hd).transpose(0, 2, 1, 3)
    v = qkv[..., d_out + kv_dim:].reshape(b, T, n_kv, hd).transpose(0, 2, 1, 3)

    if cfg["qk_norm"]:
        # TODO(synk): fuse q/k RMSNorm + RoPE into one lane-dense Pallas pass.
        q = norm(q, blk["q_norm_scale"], eps=1e-6)
        k = norm(k, blk["k_norm_scale"], eps=1e-6)

    q = apply_rope(q, cos, sin)
    k = apply_rope(k, cos, sin)
    # TODO(synk): stateful KV-cache decode path (use_cache=True, ptr/window)
    # is host-side mutable state and is not implemented here.

    if use_pallas:
        ctx = flash_attention(q, k, v, group_size=group_size)
    else:
        ctx = _attention_ref(q, k, v, group_size, hd)

    return ctx.transpose(0, 2, 1, 3).reshape(b, T, d_out)


def qwen3_forward(params, in_idx, cos, sin, cfg, *, use_pallas=True):
    norm = rmsnorm if use_pallas else rmsnorm_ref

    x = params["tok_emb"][in_idx]
    for blk in params["blocks"]:
        # --- attention sub-block ---
        shortcut = x
        h = norm(x, blk["norm1_scale"], eps=1e-6)
        ctx = _gqa_attention(h, blk, cos, sin, cfg, use_pallas=use_pallas)
        if use_pallas:
            x = linear(ctx, blk["wo"], residual=shortcut)     # fused +res
        else:
            x = linear_ref(ctx, blk["wo"]) + shortcut

        # --- feed-forward sub-block ---
        shortcut = x
        h = norm(x, blk["norm2_scale"], eps=1e-6)
        if use_pallas:
            h2d = h.reshape(-1, h.shape[-1])
            g = ffn_up(h2d, blk["fc1"], blk["fc2"], out_dtype=h.dtype)
            g = g.reshape(*h.shape[:-1], blk["fc1"].shape[-1])
            x = linear(g, blk["fc3"], residual=shortcut)      # fused +res
        else:
            g = jax.nn.silu(linear_ref(h, blk["fc1"])) * linear_ref(h, blk["fc2"])
            x = linear_ref(g, blk["fc3"]) + shortcut

    x = norm(x, params["final_norm_scale"], eps=1e-6)
    lin = linear if use_pallas else linear_ref
    logits = lin(x.astype(cfg["dtype"]), params["out_head"])
    return logits


def init_qwen3_params(cfg, key):
    dtype = cfg["dtype"]
    emb = cfg["emb_dim"]
    hidden = cfg["hidden_dim"]
    n_heads, n_kv, hd = cfg["n_heads"], cfg["n_kv_groups"], cfg["head_dim"]
    d_out, kv_dim = n_heads * hd, n_kv * hd

    def dense(k, fan_in, fan_out):
        w = jax.random.normal(k, (fan_in, fan_out), jnp.float32)
        return (w / jnp.sqrt(fan_in)).astype(dtype)

    keys = iter(jax.random.split(key, 2 + cfg["n_layers"] * 8))
    params = {
        "tok_emb": (0.5 * jax.random.normal(
            next(keys), (cfg["vocab_size"], emb), jnp.float32)).astype(dtype),
        "final_norm_scale": jnp.ones((emb,), jnp.float32),
        "out_head": dense(next(keys), emb, cfg["vocab_size"]),
        "blocks": [],
    }
    for _ in range(cfg["n_layers"]):
        wq = dense(next(keys), emb, d_out)
        wk = dense(next(keys), emb, kv_dim)
        wv = dense(next(keys), emb, kv_dim)
        params["blocks"].append({
            # QKV concatenated along N once at init -> one matmul per layer.
            "wqkv": jnp.concatenate([wq, wk, wv], axis=1),
            "wo": dense(next(keys), d_out, emb),
            "q_norm_scale": jnp.ones((hd,), jnp.float32),
            "k_norm_scale": jnp.ones((hd,), jnp.float32),
            "norm1_scale": jnp.ones((emb,), jnp.float32),
            "norm2_scale": jnp.ones((emb,), jnp.float32),
            "fc1": dense(next(keys), emb, hidden),
            "fc2": dense(next(keys), emb, hidden),
            "fc3": dense(next(keys), hidden, emb),
        })
    return params


# ---------------------------------------------------------------------------
# main
# ---------------------------------------------------------------------------

if __name__ == "__main__":
    cfg = dict(
        vocab_size=512,
        context_length=64,
        emb_dim=128,
        n_heads=4,
        head_dim=32,
        n_kv_groups=2,
        hidden_dim=256,
        n_layers=2,
        qk_norm=True,
        rope_base=10000.0,
        dtype=jnp.float32,
    )
    batch, seq = 2, 8

    key = jax.random.PRNGKey(0)
    k_param, k_idx, k_x, k_q, k_k, k_v = jax.random.split(key, 6)

    params = init_qwen3_params(cfg, k_param)
    in_idx = jax.random.randint(k_idx, (batch, seq), 0, cfg["vocab_size"])
    cos, sin = compute_rope_params(cfg["head_dim"], cfg["rope_base"],
                                   cfg["context_length"])

    # 1) RMSNorm kernel (bf16 activations, f32 compute path).
    x = jax.random.normal(k_x, (batch, seq, cfg["emb_dim"]),
                          jnp.float32).astype(jnp.bfloat16)
    scale = jnp.ones((cfg["emb_dim"],), jnp.float32)
    out = jax.block_until_ready(rmsnorm(x, scale, eps=1e-6))
    ref = rmsnorm_ref(x, scale, eps=1e-6)
    assert out.dtype == x.dtype and out.shape == x.shape
    assert jnp.allclose(out.astype(jnp.float32), ref.astype(jnp.float32),
                        atol=1e-2, rtol=1e-2)

    # 2) Matmul kernel (plain + fused-residual variants, exercises padding).
    a = jax.random.normal(jax.random.PRNGKey(1), (16, 128), jnp.float32)
    bmat = jax.random.normal(jax.random.PRNGKey(2), (128, 64), jnp.float32)
    r = jax.random.normal(jax.random.PRNGKey(3), (16, 64), jnp.float32)
    mm = jax.block_until_ready(matmul(a, bmat))
    mm_ref = jnp.dot(a, bmat, precision=jax.lax.Precision.HIGHEST)
    assert jnp.allclose(mm, mm_ref, atol=2e-2, rtol=2e-2)
    mmr = jax.block_until_ready(matmul(a, bmat, residual=r))
    assert jnp.allclose(mmr, mm_ref + r, atol=2e-2, rtol=2e-2)

    # 3) Flash-attention kernel (causal GQA) vs unfused reference.
    gsz = cfg["n_heads"] // cfg["n_kv_groups"]
    q = jax.random.normal(k_q, (batch, cfg["n_heads"], seq, cfg["head_dim"]),
                          jnp.float32)
    kk = jax.random.normal(k_k, (batch, cfg["n_kv_groups"], seq,
                                 cfg["head_dim"]), jnp.float32)
    vv = jax.random.normal(k_v, (batch, cfg["n_kv_groups"], seq,
                                 cfg["head_dim"]), jnp.float32)
    fa = jax.block_until_ready(flash_attention(q, kk, vv, group_size=gsz))
    fa_ref = _attention_ref(q, kk, vv, gsz, cfg["head_dim"])
    assert jnp.allclose(fa, fa_ref, atol=2e-2, rtol=2e-2)

    # 4) Full Qwen3 forward: Pallas-backed vs pure-JAX reference.
    logits = jax.block_until_ready(
        qwen3_forward(params, in_idx, cos, sin, cfg, use_pallas=True))
    logits_ref = qwen3_forward(params, in_idx, cos, sin, cfg, use_pallas=False)
    assert logits.shape == (batch, seq, cfg["vocab_size"])
    assert bool(jnp.all(jnp.isfinite(logits)))
    assert jnp.allclose(logits, logits_ref, atol=5e-2, rtol=5e-2)

    print("KERNEL_OK")
</pallas_src>

<mosaic_0001>
module attributes {stable_mosaic.version = 11 : i64} {
  func.func @_rmsnorm_kernel(%arg0: i32, %arg1: memref<16x128xbf16, #tpu.memory_space<vmem>>, %arg2: memref<1x128xf32, #tpu.memory_space<vmem>>, %arg3: memref<16x128xbf16, #tpu.memory_space<vmem>>) attributes {dimension_semantics = [#tpu.dimension_semantics<parallel>], iteration_bounds = array<i64: 1>, scalar_prefetch = 0 : i64, scratch_operands = 0 : i64, tpu.core_type = #tpu.core_type<tc>, window_params = [{transform_indices = @transform_0, window_bounds = array<i64: 16, 128>}, {pipeline_mode = #tpu.pipeline_mode<synchronous>, transform_indices = @transform_1, window_bounds = array<i64: 1, 128>}, {transform_indices = @transform_2, window_bounds = array<i64: 16, 128>}]} {
    %c0 = arith.constant 0 : index
    %c0_0 = arith.constant 0 : index
    %0 = vector.load %arg1[%c0, %c0_0] : memref<16x128xbf16, #tpu.memory_space<vmem>>, vector<16x128xbf16>
    %1 = arith.extf %0 : vector<16x128xbf16> to vector<16x128xf32>
    %2 = arith.mulf %1, %1 : vector<16x128xf32>
    %cst = arith.constant dense<0.000000e+00> : vector<16xf32>
    %3 = vector.multi_reduction <add>, %2, %cst [1] : vector<16x128xf32> to vector<16xf32>
    %4 = vector.shape_cast %3 : vector<16xf32> to vector<16x1xf32>
    %cst_1 = arith.constant 1.280000e+02 : f32
    %5 = vector.broadcast %cst_1 : f32 to vector<16x1xf32>
    %6 = arith.divf %4, %5 : vector<16x1xf32>
    %cst_2 = arith.constant 9.99999997E-7 : f32
    %7 = vector.broadcast %cst_2 : f32 to vector<16x1xf32>
    %8 = arith.addf %6, %7 : vector<16x1xf32>
    %9 = math.rsqrt %8 : vector<16x1xf32>
    %10 = vector.broadcast %9 : vector<16x1xf32> to vector<16x128xf32>
    %11 = arith.mulf %1, %10 : vector<16x128xf32>
    %c0_3 = arith.constant 0 : index
    %c0_4 = arith.constant 0 : index
    %12 = vector.load %arg2[%c0_3, %c0_4] : memref<1x128xf32, #tpu.memory_space<vmem>>, vector<1x128xf32>
    %13 = vector.broadcast %12 : vector<1x128xf32> to vector<16x128xf32>
    %14 = arith.mulf %11, %13 : vector<16x128xf32>
    %15 = arith.truncf %14 : vector<16x128xf32> to vector<16x128xbf16>
    %c0_5 = arith.constant 0 : index
    %c0_6 = arith.constant 0 : index
    %16 = vector.load %arg3[%c0_5, %c0_6] : memref<16x128xbf16, #tpu.memory_space<vmem>>, vector<16x128xbf16>
    tpu.vector_store %arg3[%c0_5, %c0_6], %15 {strides = array<i32>} : memref<16x128xbf16, #tpu.memory_space<vmem>>, vector<16x128xbf16>,
    return
  }
  func.func @transform_0(%arg0: i32) -> (i32, i32) {
    %c0_i32 = arith.constant 0 : i32
    %c0_i32_0 = arith.constant 0 : i32
    return %arg0, %c0_i32 : i32, i32
  }
  func.func @transform_1(%arg0: i32) -> (i32, i32) {
    %c0_i32 = arith.constant 0 : i32
    %c0_i32_0 = arith.constant 0 : i32
    %c0_i32_1 = arith.constant 0 : i32
    return %c0_i32, %c0_i32_0 : i32, i32
  }
  func.func @transform_2(%arg0: i32) -> (i32, i32) {
    %c0_i32 = arith.constant 0 : i32
    %c0_i32_0 = arith.constant 0 : i32
    return %arg0, %c0_i32 : i32, i32
  }
}

</mosaic_0001>

<bundles_post_ra>
// kernel: tpu_custom_call.1
= control target key start
LH: loop header
LB: loop body
LE: loop exit
PB: predicated region body
PF: predicated region fallthrough
CT: control target
= control target key end

     0   :  { %7 = vsyncpa [#allocation3], 0  ;;  %s181_s0 = inlined_call_operand.hbm [shape: bf16[16,128], index: 0, kind: input, shape index: {}]   ;;  %s182_s1 = inlined_call_operand.vmem [shape: f32[1,128], index: 1, kind: input, shape index: {}]   ;;  %s183_s2 = inlined_call_operand.hbm [shape: bf16[16,128], index: 2, kind: output, shape index: {}]  }
   0x1   :  { %8 = vsyncpa [#allocation4], 0  ;;  %s147_s9 = smov [#allocation2]  }
   0x2   :  { %s14_s10 = sshll.u32 %s147_s9, 4  ;;  %s15_s10 = int_to_ptr.vmem [resolvable:$true] %s14_s10 }
   0x3   :  { %s111_s11 = scalar_lea.vmem %s15_s10, 128  ;;  %p116_p1 = scmp.lt.s32.totalorder %s15_s10, %s15_s10 }
   0x4   :  { %p112_p0 = scmp.ne.s32.totalorder %s15_s10, %s111_s11  ;;  %p117_p2 = scmp.lt.s32.totalorder %s111_s11, %s111_s11 }
   0x6   :  { %p118_p3 = por %p117_p2, %p116_p1 }
   0x8   :  { %p119_p4 = pnand %p118_p3, %p112_p0 }
   0xa   :  { %122 = shalt.err (!%p119_p4)
}
   0xb   :  { %s148_s12 = smov 64   ;;  %s149_s13 = smov 4  }
   0xc   :  { %20 = dma.hbm_to_vmem [thread:$0]  %s181_s0, 128, %s15_s10, [#allocation3], %s148_s12, %s148_s12, %s149_s13  }
   0xd   :  { %143 = dma.done.wait [#allocation3], 128  }
   0xe   :  { %144 = vsyncadd [#allocation3], 4294967168  ;;  %v87_v0 = vld [vmem:[#allocation2] sm:$0xff]   ;;  %s150_s17 = smov [#allocation5]  }
   0xf   :  { %v88_v1 = vunpack.c.l.bf16 %v87_v0  ;;  %v89_v2 = vunpack.c.h.bf16 %v87_v0  ;;  %v81_v14 = vld [vmem:[%s182_s1] ss:$0 sm:$0xff]  ;;  %s69_s18 = sshll.u32 %s150_s17, 4  ;;  %s70_s18 = int_to_ptr.vmem [resolvable:$true] %s69_s18 }
  0x10   :  { %s123_s19 = scalar_lea.vmem %s70_s18, 128  ;;  %p128_p6 = scmp.lt.s32.totalorder %s70_s18, %s70_s18 }
  0x11   :  { %v30_v3 = vmul.f32 %v88_v1, %v88_v1  ;;  %v31_v4 = vmul.f32 %v89_v2, %v89_v2  ;;  %p124_p5 = scmp.ne.s32.totalorder %s70_s18, %s123_s19  ;;  %p129_p7 = scmp.lt.s32.totalorder %s123_s19, %s123_s19 }
  0x13   :  { %32 = vadd.xlane.f32.xlu0 %v30_v3  ;;  %p130_p8 = por %p129_p7, %p128_p6 }
  0x15   :  { %p131_p9 = pnand %p130_p8, %p124_p5 }
  0x17   :  { %34 = vadd.xlane.f32.xlu0 %v31_v4 }
  0x9c   :  { %v33_v5 = vpop.xlane.xlu0 %32 }
  0x9d   :  { %v37_v6 = vmul.f32 0.0078125, %v33_v5 }
  0x9f   :  { %v39_v7 = vadd.f32 1e-06, %v37_v6 }
  0xa0   :  { %v35_v8 = vpop.xlane.xlu0 %34 }
  0xa1   :  { %99 = vrsqrt.f32 %v39_v7  ;;  %v38_v9 = vmul.f32 0.0078125, %v35_v8 }
  0xa3   :  { %v40_v10 = vadd.f32 1e-06, %v38_v9 }
  0xa5   :  { %101 = vrsqrt.f32 %v40_v10 }
  0xae   :  { %v100_v11 = vpop.eup %99 }
  0xaf   :  { %v43_v12 = vmul.f32 %v100_v11, %v88_v1 }
  0xb1   :  { %v52_v16 = vmul.f32 %v81_v14, %v43_v12 }
  0xb2   :  { %v102_v13 = vpop.eup %101 }
  0xb3   :  { %v44_v15 = vmul.f32 %v102_v13, %v89_v2 }
  0xb5   :  { %v53_v17 = vmul.f32 %v81_v14, %v44_v15 }
  0xb7   :  { %v93_v18 = vpack.c.bf16 %v53_v17, %v52_v16 }
  0xb9   :  { %94 = vst [vmem:[#allocation5] sm:$0xff] %v93_v18  }
  0xba   :  { %134 = shalt.err (!%p131_p9)
}
  0xbb   :  { %75 = dma.vmem_to_hbm [thread:$0]  %s70_s18, 128, %s183_s2, [#allocation4], %s148_s12, %s148_s12, %s149_s13  }
  0xbc   :  { %145 = dma.done.wait [#allocation4], 128  }
  0xbd   :  { %146 = vsyncadd [#allocation4], 4294967168 }
  0xbe   :  { %79 = vsyncpa [#allocation3], 1 }
  0xbf   :  { %80 = vsyncpa [#allocation4], 1 }

</bundles_post_ra>
